<compile_context>
chip_gen: v5e
topology: v5e:2x2
jax: 0.10.0
libtpu: 0.0.40
codegen_flags: <defaults>
</compile_context>

<pallas_src>
import functools

import jax
import jax.numpy as jnp
from jax import lax
from jax.experimental import pallas as pl
from jax.experimental.pallas import tpu as pltpu


# ---------------------------------------------------------------------------
# helpers
# ---------------------------------------------------------------------------
def _round_up(x, m):
    return ((x + m - 1) // m) * m


def _pick_tile(dim, candidates):
    for c in candidates:
        if c <= dim and dim % c == 0:
            return c
    return dim


def _pick_row_tile(n_pad, candidates=(512, 256, 128)):
    # Prefer >=2 row tiles so the "parallel" axis feeds both v7x TensorCores.
    for c in candidates:
        if n_pad % c == 0 and n_pad // c >= 2:
            return c
    return n_pad


def _pad2d(x, rows, cols, dtype):
    out = jnp.zeros((rows, cols), dtype)
    return out.at[: x.shape[0], : x.shape[1]].set(x.astype(dtype))


def _hash_u32(x):
    """Cheap integer mix (xorshift-multiply) on uint32; VPU-only ops, interpret-safe."""
    x = x ^ (x >> 16)
    x = x * jnp.uint32(0x7FEB352D)
    x = x ^ (x >> 15)
    x = x * jnp.uint32(0x846CA68B)
    x = x ^ (x >> 16)
    return x


def _epilogue(h, *, activation, dropout_p, seed, row_offset):
    """bias already added; h is f32. relu+dropout for hidden layers, sigmoid for last."""
    if activation == "sigmoid":
        return jax.nn.sigmoid(h)
    h = jnp.maximum(h, 0.0)
    if dropout_p > 0.0:
        rows, cols = h.shape
        row = (lax.broadcasted_iota(jnp.int32, (rows, cols), 0) + row_offset).astype(jnp.uint32)
        col = lax.broadcasted_iota(jnp.int32, (rows, cols), 1).astype(jnp.uint32)
        ctr = row * jnp.uint32(cols) + col
        seed_c = jnp.uint32((int(seed) * 0x9E3779B9) & 0xFFFFFFFF)
        bits = _hash_u32(ctr ^ seed_c)
        # keep with prob (1-p): compare raw bits against an integer threshold
        thr = min(max(int(round(dropout_p * 4294967296.0)), 0), 4294967295)
        keep = bits >= jnp.uint32(thr)
        h = jnp.where(keep, h * (1.0 / (1.0 - dropout_p)), 0.0)
    return h


# ---------------------------------------------------------------------------
# kernel A: fused single-block layer (small graphs):  sigma(A @ (X @ W) + b)
# ---------------------------------------------------------------------------
def _fused_layer_kernel(a_ref, x_ref, w_ref, b_ref, o_ref, *, activation, dropout_p, seed):
    xw = jnp.dot(x_ref[...], w_ref[...],
                 preferred_element_type=jnp.float32).astype(jnp.bfloat16)
    h = jnp.dot(a_ref[...], xw, preferred_element_type=jnp.float32) + b_ref[...]
    h = _epilogue(h, activation=activation, dropout_p=dropout_p, seed=seed, row_offset=0)
    o_ref[...] = h.astype(o_ref.dtype)


# ---------------------------------------------------------------------------
# kernel B1: feature transform  XW = H @ W  (tiled matmul, bf16 out, f32 acc)
# ---------------------------------------------------------------------------
def _xw_kernel(x_ref, w_ref, o_ref, acc_ref):
    kk = pl.program_id(2)
    nk = pl.num_programs(2)

    @pl.when(kk == 0)
    def _():
        acc_ref[...] = jnp.zeros_like(acc_ref)

    acc_ref[...] += jnp.dot(x_ref[...], w_ref[...], preferred_element_type=jnp.float32)

    @pl.when(kk == nk - 1)
    def _():
        o_ref[...] = acc_ref[...].astype(o_ref.dtype)


# ---------------------------------------------------------------------------
# kernel B2: aggregation  H_out = A_hat @ XW + b  (+ activation / dropout epilogue)
# grid = (row tiles, k tiles); accumulator finalized on the last k step.
# ---------------------------------------------------------------------------
def _agg_kernel(a_ref, xw_ref, b_ref, o_ref, acc_ref, *,
                tm, tk, xw_resident, activation, dropout_p, seed):
    # program_id / num_programs only at the kernel top level (interpret-safe).
    i = pl.program_id(0)
    k = pl.program_id(1)
    nk = pl.num_programs(1)
    row_offset = i * tm

    @pl.when(k == 0)
    def _():
        acc_ref[...] = jnp.zeros_like(acc_ref)

    if xw_resident:
        xw = xw_ref[pl.ds(k * tk, tk), :]   # XW stays VMEM-resident, slice per k step
    else:
        xw = xw_ref[...]
    acc_ref[...] += jnp.dot(a_ref[...], xw, preferred_element_type=jnp.float32)

    @pl.when(k == nk - 1)
    def _():
        h = acc_ref[...] + b_ref[...]
        h = _epilogue(h, activation=activation, dropout_p=dropout_p,
                      seed=seed, row_offset=row_offset)
        o_ref[...] = h.astype(o_ref.dtype)


# ---------------------------------------------------------------------------
# one GCN layer
# ---------------------------------------------------------------------------
def gcn_layer(a_pad, x_pad, w_pad, b_pad, *, seed, activation, dropout_p, tm, tk):
    n_pad = a_pad.shape[0]
    f_in_pad = x_pad.shape[1]
    f_out_pad = w_pad.shape[1]
    out_dtype = jnp.float32 if activation == "sigmoid" else jnp.bfloat16
    out_bytes_per = 4 if out_dtype == jnp.float32 else 2

    # ---- fused single-block path for small graphs ---------------------------
    if n_pad <= 256:
        kernel = functools.partial(_fused_layer_kernel, activation=activation,
                                   dropout_p=dropout_p, seed=seed)
        return pl.pallas_call(
            kernel,
            out_shape=jax.ShapeDtypeStruct((n_pad, f_out_pad), out_dtype),
            grid=(1,),
            in_specs=[
                pl.BlockSpec((n_pad, n_pad), lambda i: (0, 0)),
                pl.BlockSpec((n_pad, f_in_pad), lambda i: (0, 0)),
                pl.BlockSpec((f_in_pad, f_out_pad), lambda i: (0, 0)),
                pl.BlockSpec((1, f_out_pad), lambda i: (0, 0)),
            ],
            out_specs=pl.BlockSpec((n_pad, f_out_pad), lambda i: (0, 0)),
            compiler_params=pltpu.CompilerParams(dimension_semantics=("arbitrary",)),
        )(a_pad, x_pad, w_pad, b_pad)

    # ---- stage 1: XW = X @ W (tiled, bf16 in / bf16 out, f32 accumulate) ----
    tm1 = _pick_tile(n_pad, (256, 128))
    tn1 = _pick_tile(f_out_pad, (512, 256, 128))
    tk1 = _pick_tile(f_in_pad, (512, 256, 128))
    xw = pl.pallas_call(
        _xw_kernel,
        out_shape=jax.ShapeDtypeStruct((n_pad, f_out_pad), jnp.bfloat16),
        grid=(n_pad // tm1, f_out_pad // tn1, f_in_pad // tk1),
        in_specs=[
            pl.BlockSpec((tm1, tk1), lambda i, j, kk: (i, kk)),
            pl.BlockSpec((tk1, tn1), lambda i, j, kk: (kk, j)),
        ],
        out_specs=pl.BlockSpec((tm1, tn1), lambda i, j, kk: (i, j)),
        scratch_shapes=[pltpu.VMEM((tm1, tn1), jnp.float32)],
        compiler_params=pltpu.CompilerParams(
            dimension_semantics=("parallel", "parallel", "arbitrary")),
        cost_estimate=pl.CostEstimate(
            flops=2 * n_pad * f_in_pad * f_out_pad,
            transcendentals=0,
            bytes_accessed=2 * n_pad * f_in_pad + 2 * f_in_pad * f_out_pad
            + 2 * n_pad * f_out_pad),
    )(x_pad, w_pad)

    # ---- stage 2: A_hat @ XW + b with fused epilogue -------------------------
    xw_resident = n_pad * f_out_pad * 2 <= 8 * 1024 * 1024

    def vmem_need(tm_, tk_):
        a_b = 2 * tm_ * tk_ * 2                                   # A_hat double-buffered
        xw_b = (2 * n_pad * f_out_pad * 2) if xw_resident else (2 * tk_ * f_out_pad * 2)
        acc_b = tm_ * f_out_pad * 4
        out_b = 2 * tm_ * f_out_pad * out_bytes_per
        bias_b = 2 * 8 * f_out_pad * 4
        return a_b + xw_b + acc_b + out_b + bias_b

    budget = 40 * 1024 * 1024      # leaves headroom under v7x's 64 MiB VMEM
    while vmem_need(tm, tk) > budget and tk >= 256:
        tk //= 2
    while vmem_need(tm, tk) > budget and tm >= 256:
        tm //= 2
    vmem_limit = int(min(64 * 1024 * 1024,
                         max(32 * 1024 * 1024, vmem_need(tm, tk) + 8 * 1024 * 1024)))

    if xw_resident:
        xw_spec = pl.BlockSpec((n_pad, f_out_pad), lambda i, k: (0, 0))
        xw_read_bytes = n_pad * f_out_pad * 2
    else:
        xw_spec = pl.BlockSpec((tk, f_out_pad), lambda i, k: (k, 0))
        xw_read_bytes = (n_pad // tm) * n_pad * f_out_pad * 2

    kernel = functools.partial(_agg_kernel, tm=tm, tk=tk, xw_resident=xw_resident,
                               activation=activation, dropout_p=dropout_p, seed=seed)
    transc = n_pad * f_out_pad if activation == "sigmoid" else 0
    return pl.pallas_call(
        kernel,
        out_shape=jax.ShapeDtypeStruct((n_pad, f_out_pad), out_dtype),
        grid=(n_pad // tm, n_pad // tk),
        in_specs=[
            pl.BlockSpec((tm, tk), lambda i, k: (i, k)),       # A_hat (bf16)
            xw_spec,                                           # XW (bf16)
            pl.BlockSpec((1, f_out_pad), lambda i, k: (0, 0)),  # bias (f32)
        ],
        out_specs=pl.BlockSpec((tm, f_out_pad), lambda i, k: (i, 0)),
        scratch_shapes=[pltpu.VMEM((tm, f_out_pad), jnp.float32)],
        compiler_params=pltpu.CompilerParams(
            dimension_semantics=("parallel", "arbitrary"),
            vmem_limit_bytes=vmem_limit),
        cost_estimate=pl.CostEstimate(
            flops=2 * n_pad * n_pad * f_out_pad,
            transcendentals=transc,
            bytes_accessed=n_pad * n_pad * 2 + xw_read_bytes
            + n_pad * f_out_pad * out_bytes_per),
    )(a_pad, xw, b_pad)


# ---------------------------------------------------------------------------
# full forward pass (mirrors Graph_conv_net.forward)
# ---------------------------------------------------------------------------
def graph_conv_net_forward(a_hat, inputs, params, *, num_hid_layers,
                           dropout_frac, base_seed=0):
    dropout_p = float(dropout_frac)
    assert 0.0 <= dropout_p < 1.0, "dropout_frac must be in [0, 1)"
    n = a_hat.shape[0]
    n_classes = params[-1][0].shape[1]
    assert len(params) == num_hid_layers + 1

    n_pad = _round_up(n, 128)                       # pad to 128, never to tk
    tm = _pick_row_tile(n_pad)                      # 512/256/128, >=2 row tiles if possible
    tk = _pick_tile(n_pad, (2048, 1024, 512, 256, 128))

    a_pad = _pad2d(a_hat, n_pad, n_pad, jnp.bfloat16)
    h = _pad2d(inputs, n_pad, _round_up(inputs.shape[1], 128), jnp.bfloat16)

    for i, (w, b) in enumerate(params):
        f_in, f_out = w.shape
        f_in_pad, f_out_pad = _round_up(f_in, 128), _round_up(f_out, 128)
        assert h.shape[1] == f_in_pad
        w_pad = _pad2d(w, f_in_pad, f_out_pad, jnp.bfloat16)
        b_pad = _pad2d(b.reshape(1, -1), 1, f_out_pad, jnp.float32)
        activation = "sigmoid" if i == num_hid_layers else "relu"
        h = gcn_layer(a_pad, h, w_pad, b_pad, seed=base_seed + i,
                      activation=activation, dropout_p=dropout_p, tm=tm, tk=tk)
    return h[:n, :n_classes]


# ---------------------------------------------------------------------------
# pure-JAX reference (mirrors the kernel's bf16 casts; dropout assumed off)
# ---------------------------------------------------------------------------
def reference_forward(a_hat, x, params, num_hid_layers):
    a = a_hat.astype(jnp.bfloat16)
    h = x.astype(jnp.bfloat16)
    for i, (w, b) in enumerate(params):
        xw = jnp.dot(h, w.astype(jnp.bfloat16),
                     preferred_element_type=jnp.float32).astype(jnp.bfloat16)
        z = jnp.dot(a, xw, preferred_element_type=jnp.float32) + b
        if i == num_hid_layers:
            h = jax.nn.sigmoid(z)
        else:
            h = jnp.maximum(z, 0.0).astype(jnp.bfloat16)
    return h


# ---------------------------------------------------------------------------
# synthetic problem setup
# ---------------------------------------------------------------------------
def make_params(key, input_features, hidden_size, number_classes, num_hid_layers):
    dims = [input_features] + [hidden_size] * num_hid_layers + [number_classes]
    params = []
    for i in range(len(dims) - 1):
        key, sub = jax.random.split(key)
        w = (jax.random.normal(sub, (dims[i], dims[i + 1]), jnp.float32)
             * (1.0 / jnp.sqrt(jnp.float32(dims[i]))))
        b = jnp.zeros((1, dims[i + 1]), jnp.float32)
        params.append((w, b))
    return params


def build_normalized_adjacency(key, n):
    a = (jax.random.uniform(key, (n, n)) < 0.25).astype(jnp.float32)
    a = jnp.maximum(a, a.T)
    a = jnp.maximum(a, jnp.eye(n, dtype=jnp.float32))
    deg = jnp.sum(a, axis=1)
    d_inv_sqrt = 1.0 / jnp.sqrt(deg)
    return a * d_inv_sqrt[:, None] * d_inv_sqrt[None, :]


if __name__ == "__main__":
    key = jax.random.PRNGKey(0)

    def run_case(n, f_in, hidden, classes, hid_layers, dropout, case_key, check_ref):
        k_adj, k_x, k_p = jax.random.split(case_key, 3)
        a_hat = build_normalized_adjacency(k_adj, n)
        x = jax.random.normal(k_x, (n, f_in), jnp.float32)
        params = make_params(k_p, f_in, hidden, classes, hid_layers)
        out = graph_conv_net_forward(a_hat, x, params,
                                     num_hid_layers=hid_layers,
                                     dropout_frac=dropout)
        out = jax.block_until_ready(out)
        assert out.shape == (n, classes)
        assert bool(jnp.all(jnp.isfinite(out)))
        assert bool(jnp.all((out >= 0.0) & (out <= 1.0)))     # final sigmoid range
        if check_ref:
            ref = reference_forward(a_hat, x, params, hid_layers)
            assert bool(jnp.allclose(out, ref, atol=3e-2, rtol=3e-2)), "mismatch vs reference"
        return out

    k1, k2, k3 = jax.random.split(key, 3)
    # tiny graph -> fused single-block path; dropout off -> numerical check vs reference
    run_case(16, 8, 32, 4, 2, 0.0, k1, True)
    # tiny graph, dropout on (training-mode semantics) -> range/finiteness checks only
    run_case(16, 8, 32, 4, 2, 0.1, k2, False)
    # larger graph -> two-stage tiled path (multi-step grid); dropout off -> numerical check
    run_case(300, 64, 128, 8, 2, 0.0, k3, True)

    print("KERNEL_OK")
</pallas_src>

<mosaic_0001>
module attributes {stable_mosaic.version = 11 : i64} {
  func.func @_fused_layer_kernel(%arg0: i32, %arg1: memref<128x128xbf16, #tpu.memory_space<vmem>>, %arg2: memref<128x128xbf16, #tpu.memory_space<vmem>>, %arg3: memref<128x128xbf16, #tpu.memory_space<vmem>>, %arg4: memref<1x128xf32, #tpu.memory_space<vmem>>, %arg5: memref<128x128xbf16, #tpu.memory_space<vmem>>) attributes {dimension_semantics = [#tpu.dimension_semantics<arbitrary>], iteration_bounds = array<i64: 1>, scalar_prefetch = 0 : i64, scratch_operands = 0 : i64, tpu.core_type = #tpu.core_type<tc>, window_params = [{pipeline_mode = #tpu.pipeline_mode<synchronous>, transform_indices = @transform_0, window_bounds = array<i64: 128, 128>}, {pipeline_mode = #tpu.pipeline_mode<synchronous>, transform_indices = @transform_1, window_bounds = array<i64: 128, 128>}, {pipeline_mode = #tpu.pipeline_mode<synchronous>, transform_indices = @transform_2, window_bounds = array<i64: 128, 128>}, {pipeline_mode = #tpu.pipeline_mode<synchronous>, transform_indices = @transform_3, window_bounds = array<i64: 1, 128>}, {pipeline_mode = #tpu.pipeline_mode<synchronous>, transform_indices = @transform_4, window_bounds = array<i64: 128, 128>}]} {
    %c0 = arith.constant 0 : index
    %c0_0 = arith.constant 0 : index
    %0 = vector.load %arg2[%c0, %c0_0] : memref<128x128xbf16, #tpu.memory_space<vmem>>, vector<128x128xbf16>
    %c0_1 = arith.constant 0 : index
    %c0_2 = arith.constant 0 : index
    %1 = vector.load %arg3[%c0_1, %c0_2] : memref<128x128xbf16, #tpu.memory_space<vmem>>, vector<128x128xbf16>
    %cst = arith.constant dense<0.000000e+00> : vector<128x128xf32>
    %2 = tpu.matmul %0, %1, %cst {dimension_numbers = #tpu.dot_dimension_numbers<[1], [0], [0], [1], [0, 0, 1, 1], [], []>} : vector<128x128xbf16>, vector<128x128xbf16>, vector<128x128xf32> -> vector<128x128xf32>
    %3 = arith.truncf %2 : vector<128x128xf32> to vector<128x128xbf16>
    %c0_3 = arith.constant 0 : index
    %c0_4 = arith.constant 0 : index
    %4 = vector.load %arg1[%c0_3, %c0_4] : memref<128x128xbf16, #tpu.memory_space<vmem>>, vector<128x128xbf16>
    %cst_5 = arith.constant dense<0.000000e+00> : vector<128x128xf32>
    %5 = tpu.matmul %4, %3, %cst_5 {dimension_numbers = #tpu.dot_dimension_numbers<[1], [0], [0], [1], [0, 0, 1, 1], [], []>} : vector<128x128xbf16>, vector<128x128xbf16>, vector<128x128xf32> -> vector<128x128xf32>
    %c0_6 = arith.constant 0 : index
    %c0_7 = arith.constant 0 : index
    %6 = vector.load %arg4[%c0_6, %c0_7] : memref<1x128xf32, #tpu.memory_space<vmem>>, vector<1x128xf32>
    %7 = vector.broadcast %6 : vector<1x128xf32> to vector<128x128xf32>
    %8 = arith.addf %5, %7 : vector<128x128xf32>
    %cst_8 = arith.constant 0.000000e+00 : f32
    %9 = vector.broadcast %cst_8 : f32 to vector<128x128xf32>
    %10 = arith.maximumf %8, %9 : vector<128x128xf32>
    %11 = arith.truncf %10 : vector<128x128xf32> to vector<128x128xbf16>
    %c0_9 = arith.constant 0 : index
    %c0_10 = arith.constant 0 : index
    %12 = vector.load %arg5[%c0_9, %c0_10] : memref<128x128xbf16, #tpu.memory_space<vmem>>, vector<128x128xbf16>
    tpu.vector_store %arg5[%c0_9, %c0_10], %11 {strides = array<i32>} : memref<128x128xbf16, #tpu.memory_space<vmem>>, vector<128x128xbf16>,
    return
  }
  func.func @transform_0(%arg0: i32) -> (i32, i32) {
    %c0_i32 = arith.constant 0 : i32
    %c0_i32_0 = arith.constant 0 : i32
    %c0_i32_1 = arith.constant 0 : i32
    return %c0_i32, %c0_i32_0 : i32, i32
  }
  func.func @transform_1(%arg0: i32) -> (i32, i32) {
    %c0_i32 = arith.constant 0 : i32
    %c0_i32_0 = arith.constant 0 : i32
    %c0_i32_1 = arith.constant 0 : i32
    return %c0_i32, %c0_i32_0 : i32, i32
  }
  func.func @transform_2(%arg0: i32) -> (i32, i32) {
    %c0_i32 = arith.constant 0 : i32
    %c0_i32_0 = arith.constant 0 : i32
    %c0_i32_1 = arith.constant 0 : i32
    return %c0_i32, %c0_i32_0 : i32, i32
  }
  func.func @transform_3(%arg0: i32) -> (i32, i32) {
    %c0_i32 = arith.constant 0 : i32
    %c0_i32_0 = arith.constant 0 : i32
    %c0_i32_1 = arith.constant 0 : i32
    return %c0_i32, %c0_i32_0 : i32, i32
  }
  func.func @transform_4(%arg0: i32) -> (i32, i32) {
    %c0_i32 = arith.constant 0 : i32
    %c0_i32_0 = arith.constant 0 : i32
    %c0_i32_1 = arith.constant 0 : i32
    return %c0_i32, %c0_i32_0 : i32, i32
  }
}

</mosaic_0001>

<bundles_post_ra>
// kernel: tpu_custom_call.1
= control target key start
LH: loop header
LB: loop body
LE: loop exit
PB: predicated region body
PF: predicated region fallthrough
CT: control target
= control target key end

     0   :  { %9 = vsyncpa [#allocation3], 0  ;;  %s785_s0 = inlined_call_operand.hbm [shape: bf16[128,128], index: 0, kind: input, shape index: {}]   ;;  %s786_s1 = inlined_call_operand.hbm [shape: bf16[128,128], index: 1, kind: input, shape index: {}]   ;;  %s787_s2 = inlined_call_operand.hbm [shape: bf16[128,128], index: 2, kind: input, shape index: {}]   ;;  %s788_s3 = inlined_call_operand.vmem [shape: f32[1,128], index: 3, kind: input, shape index: {}]   ;;  %s789_s4 = inlined_call_operand.hbm [shape: bf16[128,128], index: 4, kind: output, shape index: {}]  }
   0x1   :  { %10 = vsyncpa [#allocation6], 0 }
   0x2   :  { %11 = vsyncpa [#allocation4], 0  ;;  %s29_s17 = sshll.u32 %s786_s1, 4  ;;  %s727_s18 = smov [#allocation5]   ;;  %s30_s17 = int_to_ptr.hbm [resolvable:$true] %s29_s17 }
   0x3   :  { %s31_s19 = sshll.u32 %s727_s18, 4  ;;  %s16_s22 = sshll.u32 %s785_s0, 4  ;;  %s32_s19 = int_to_ptr.vmem [resolvable:$true] %s31_s19  ;;  %s17_s22 = int_to_ptr.hbm [resolvable:$true] %s16_s22 }
   0x4   :  { %s728_s23 = smov 64   ;;  %s729_s24 = smov 4  }
   0x5   :  { %37 = dma.hbm_to_vmem [thread:$0]  %s30_s17, 1024, %s32_s19, [#allocation6], %s728_s23, %s728_s23, %s729_s24  }
   0x6   :  { %s730_s25 = smov [#allocation2]   ;;  %s42_s1 = sshll.u32 %s787_s2, 4  ;;  %s43_s1 = int_to_ptr.hbm [resolvable:$true] %s42_s1 }
   0x7   :  { %s18_s26 = sshll.u32 %s730_s25, 4  ;;  %s731_s0 = smov [#allocation7]   ;;  %s19_s26 = int_to_ptr.vmem [resolvable:$true] %s18_s26 }
   0x8   :  { %24 = dma.hbm_to_vmem [thread:$0]  %s17_s22, 1024, %s19_s26, [#allocation3], %s728_s23, %s728_s23, %s729_s24  }
   0x9   :  { %s44_s29 = sshll.u32 %s731_s0, 4  ;;  %s45_s29 = int_to_ptr.vmem [resolvable:$true] %s44_s29 }
   0xa   :  { %50 = dma.hbm_to_vmem [thread:$0]  %s43_s1, 1024, %s45_s29, [#allocation6], %s728_s23, %s728_s23, %s729_s24  }
   0xb   :  { %721 = dma.done.wait [#allocation3], 1024  }
   0xc   :  { %722 = vsyncadd [#allocation3], 4294966272 }
   0xd   :  { %723 = dma.done.wait [#allocation6], 2048  }
   0xe   :  { %724 = vsyncadd [#allocation6], 4294965248  ;;  %v546_v0 = vld [vmem:[#allocation7 + $0x38] sm:$0xff]  ;;  %v545_v1 = vld [vmem:[#allocation7 + $0x30] sm:$0xff]  ;;  %s421_s8 = sshll.u32 %s789_s4, 4  ;;  %s422_s8 = int_to_ptr.hbm [resolvable:$true] %s421_s8 }
   0xf   :  { %602 = vmatpush.bf16.msra.mxu2 %v546_v0  ;;  %193 = vmatpush.bf16.msra.mxu0 %v546_v0  ;;  %v544_v2 = vld [vmem:[#allocation7 + $0x28] sm:$0xff]  ;;  %v543_v3 = vld [vmem:[#allocation7 + $0x20] sm:$0xff]  ;;  %v542_v4 = vld [vmem:[#allocation7 + $0x18] sm:$0xff] }
  0x10   :  { %v541_v5 = vld [vmem:[#allocation7 + $0x10] sm:$0xff]  ;;  %v540_v6 = vld [vmem:[#allocation7 + $0x8] sm:$0xff]  ;;  %v539_v7 = vld [vmem:[#allocation7] sm:$0xff] }
  0x11   :  { %v535_v8 = vld [vmem:[#allocation5 + $0x20] sm:$0xff]  ;;  %v536_v10 = vld [vmem:[#allocation5 + $0x28] sm:$0xff]  ;;  %v537_v12 = vld [vmem:[#allocation5 + $0x30] sm:$0xff] }
  0x12   :  { %v531_v9 = vld [vmem:[#allocation5] sm:$0xff]  ;;  %v532_v11 = vld [vmem:[#allocation5 + $0x8] sm:$0xff]  ;;  %v533_v13 = vld [vmem:[#allocation5 + $0x10] sm:$0xff] }
  0x13   :  { %603 = vmatpush.bf16.msra.mxu2 %v545_v1  ;;  %194 = vmatpush.bf16.msra.mxu0 %v545_v1  ;;  %v538_v14 = vld [vmem:[#allocation5 + $0x38] sm:$0xff]  ;;  %v547_v40 = vld [vmem:[#allocation2] sm:$0xff]  ;;  %v548_v42 = vld [vmem:[#allocation2 + $0x8] sm:$0xff] }
  0x14   :  { %v534_v15 = vld [vmem:[#allocation5 + $0x18] sm:$0xff]  ;;  %v551_v41 = vld [vmem:[#allocation2 + $0x20] sm:$0xff]  ;;  %v552_v43 = vld [vmem:[#allocation2 + $0x28] sm:$0xff] }
  0x15   :  { %v549_v44 = vld [vmem:[#allocation2 + $0x10] sm:$0xff]  ;;  %v550_v46 = vld [vmem:[#allocation2 + $0x18] sm:$0xff]  ;;  %v624_v49 = vld [vmem:[%s788_s3] ss:$0 sm:$0xff]  ;;  %s732_s3 = smov [#allocation8]  }
  0x16   :  { %v553_v45 = vld [vmem:[#allocation2 + $0x30] sm:$0xff]  ;;  %v554_v47 = vld [vmem:[#allocation2 + $0x38] sm:$0xff]  ;;  %s419_s5 = sshll.u32 %s732_s3, 4  ;;  %s420_s5 = int_to_ptr.vmem [resolvable:$true] %s419_s5 }
  0x17   :  { %604 = vmatpush.bf16.msra.mxu2 %v544_v2  ;;  %195 = vmatpush.bf16.msra.mxu0 %v544_v2 }
  0x1b   :  { %605 = vmatpush.bf16.msra.mxu2 %v543_v3  ;;  %196 = vmatpush.bf16.msra.mxu0 %v543_v3 }
  0x1f   :  { %606 = vmatpush.bf16.msra.mxu2 %v542_v4  ;;  %197 = vmatpush.bf16.msra.mxu0 %v542_v4 }
  0x23   :  { %607 = vmatpush.bf16.msra.mxu2 %v541_v5  ;;  %198 = vmatpush.bf16.msra.mxu0 %v541_v5 }
  0x27   :  { %608 = vmatpush.bf16.msra.mxu2 %v540_v6  ;;  %199 = vmatpush.bf16.msra.mxu0 %v540_v6 }
  0x2b   :  { %609 = vmatpush.bf16.msra.mxu2 %v539_v7  ;;  %200 = vmatpush.bf16.msra.mxu0 %v539_v7 }
  0x2e   :  { %221 = vmatmul.bf16.vlgmr.msra.gmra.mxu2 %v535_v8  ;;  %201 = vmatmul.bf16.vlgmr.msra.gmra.mxu0 %v531_v9 }
  0x3e   :  { %226 = vmatmul.bf16.gmra.mxu2 %v536_v10  ;;  %206 = vmatmul.bf16.gmra.mxu0 %v532_v11 }
  0x4e   :  { %231 = vmatmul.bf16.gmra.mxu2 %v537_v12  ;;  %211 = vmatmul.bf16.gmra.mxu0 %v533_v13 }
  0x5e   :  { %236 = vmatmul.bf16.gmra.mxu2 %v538_v14  ;;  %216 = vmatmul.bf16.gmra.mxu0 %v534_v15 }
  0xab   :  { %v202_v17 = vpop.f32.mrf.mxu0 }
  0xb1   :  { %v222_v16 = vpop.f32.mrf.mxu2 }
  0xb3   :  { %v204_v19 = vpop.f32.mrf.mxu0 }
  0xb4   :  { %v242_v39 = vpack.c.bf16 %v204_v19, %v202_v17 }
  0xb9   :  { %v224_v18 = vpop.f32.mrf.mxu2 }
  0xba   :  { %v246_v34 = vpack.c.bf16 %v224_v18, %v222_v16 }
  0xbb   :  { %v207_v21 = vpop.f32.mrf.mxu0 }
  0xc1   :  { %v227_v20 = vpop.f32.mrf.mxu2 }
  0xc3   :  { %v209_v23 = vpop.f32.mrf.mxu0 }
  0xc4   :  { %v243_v38 = vpack.c.bf16 %v209_v23, %v207_v21 }
  0xc9   :  { %v229_v22 = vpop.f32.mrf.mxu2 }
  0xca   :  { %v247_v33 = vpack.c.bf16 %v229_v22, %v227_v20 }
  0xcb   :  { %v212_v25 = vpop.f32.mrf.mxu0 }
  0xd1   :  { %v232_v24 = vpop.f32.mrf.mxu2 }
  0xd3   :  { %v214_v28 = vpop.f32.mrf.mxu0 }
  0xd4   :  { %v244_v37 = vpack.c.bf16 %v214_v28, %v212_v25 }
  0xd9   :  { %v234_v26 = vpop.f32.mrf.mxu2 }
  0xda   :  { %v248_v32 = vpack.c.bf16 %v234_v26, %v232_v24 }
  0xdb   :  { %v217_v31 = vpop.f32.mrf.mxu0 }
  0xe1   :  { %v237_v27 = vpop.f32.mrf.mxu2 }
  0xe3   :  { %v219_v35 = vpop.f32.mrf.mxu0 }
  0xe4   :  { %v245_v36 = vpack.c.bf16 %v219_v35, %v217_v31 }
  0xe9   :  { %v239_v29 = vpop.f32.mrf.mxu2 }
  0xea   :  { %v249_v30 = vpack.c.bf16 %v239_v29, %v237_v27 }
  0xec   :  { %318 = vmatpush.bf16.msra.mxu1 %v249_v30  ;;  %610 = vmatpush.bf16.msra.mxu3 %v249_v30 }
  0xf0   :  { %319 = vmatpush.bf16.msra.mxu1 %v248_v32  ;;  %611 = vmatpush.bf16.msra.mxu3 %v248_v32 }
  0xf4   :  { %320 = vmatpush.bf16.msra.mxu1 %v247_v33  ;;  %612 = vmatpush.bf16.msra.mxu3 %v247_v33 }
  0xf8   :  { %321 = vmatpush.bf16.msra.mxu1 %v246_v34  ;;  %613 = vmatpush.bf16.msra.mxu3 %v246_v34 }
  0xfc   :  { %322 = vmatpush.bf16.msra.mxu1 %v245_v36  ;;  %614 = vmatpush.bf16.msra.mxu3 %v245_v36 }
 0x100   :  { %323 = vmatpush.bf16.msra.mxu1 %v244_v37  ;;  %615 = vmatpush.bf16.msra.mxu3 %v244_v37 }
 0x104   :  { %324 = vmatpush.bf16.msra.mxu1 %v243_v38  ;;  %616 = vmatpush.bf16.msra.mxu3 %v243_v38 }
 0x108   :  { %325 = vmatpush.bf16.msra.mxu1 %v242_v39  ;;  %617 = vmatpush.bf16.msra.mxu3 %v242_v39 }
 0x10b   :  { %326 = vmatmul.bf16.vlgmr.msra.gmra.mxu1 %v547_v40  ;;  %346 = vmatmul.bf16.vlgmr.msra.gmra.mxu3 %v551_v41 }
 0x11b   :  { %331 = vmatmul.bf16.gmra.mxu1 %v548_v42  ;;  %351 = vmatmul.bf16.gmra.mxu3 %v552_v43 }
 0x12b   :  { %336 = vmatmul.bf16.gmra.mxu1 %v549_v44  ;;  %356 = vmatmul.bf16.gmra.mxu3 %v553_v45 }
 0x13b   :  { %341 = vmatmul.bf16.gmra.mxu1 %v550_v46  ;;  %361 = vmatmul.bf16.gmra.mxu3 %v554_v47 }
 0x188   :  { %v327_v48 = vpop.f32.mrf.mxu1 }
 0x189   :  { %v328_v51 = vadd.f32 %v624_v49, %v327_v48 }
 0x18b   :  { %v367_v54 = vmax.f32 %v328_v51, 0.0 }
 0x18e   :  { %v347_v50 = vpop.f32.mrf.mxu3 }
 0x18f   :  { %v348_v56 = vadd.f32 %v624_v49, %v347_v50 }
 0x190   :  { %v329_v52 = vpop.f32.mrf.mxu1 }
 0x191   :  { %v330_v53 = vadd.f32 %v624_v49, %v329_v52  ;;  %v375_v61 = vmax.f32 %v348_v56, 0.0 }
 0x193   :  { %v368_v55 = vmax.f32 %v330_v53, 0.0 }
 0x195   :  { %v558_v57 = vpack.c.bf16 %v368_v55, %v367_v54 }
 0x196   :  { %v349_v58 = vpop.f32.mrf.mxu3 }
 0x197   :  { %559 = vst [vmem:[#allocation8] sm:$0xff] %v558_v57   ;;  %v350_v59 = vadd.f32 %v624_v49, %v349_v58 }
 0x198   :  { %v332_v60 = vpop.f32.mrf.mxu1 }
 0x199   :  { %v376_v62 = vmax.f32 %v350_v59, 0.0  ;;  %v333_v1 = vadd.f32 %v624_v49, %v332_v60 }
 0x19b   :  { %v578_v63 = vpack.c.bf16 %v376_v62, %v375_v61  ;;  %v369_v4 = vmax.f32 %v333_v1, 0.0 }
 0x19d   :  { %598 = vst [vmem:[#allocation8 + $0x20] sm:$0xff] %v578_v63  }
 0x19e   :  { %v352_v0 = vpop.f32.mrf.mxu3 }
 0x19f   :  { %v353_v6 = vadd.f32 %v624_v49, %v352_v0 }
 0x1a0   :  { %v334_v2 = vpop.f32.mrf.mxu1 }
 0x1a1   :  { %v335_v3 = vadd.f32 %v624_v49, %v334_v2  ;;  %v377_v11 = vmax.f32 %v353_v6, 0.0 }
 0x1a3   :  { %v370_v5 = vmax.f32 %v335_v3, 0.0 }
 0x1a5   :  { %v563_v7 = vpack.c.bf16 %v370_v5, %v369_v4 }
 0x1a6   :  { %v354_v8 = vpop.f32.mrf.mxu3 }
 0x1a7   :  { %595 = vst [vmem:[#allocation8 + $0x8] sm:$0xff] %v563_v7   ;;  %v355_v9 = vadd.f32 %v624_v49, %v354_v8 }
 0x1a8   :  { %v337_v10 = vpop.f32.mrf.mxu1 }
 0x1a9   :  { %v378_v12 = vmax.f32 %v355_v9, 0.0  ;;  %v338_v15 = vadd.f32 %v624_v49, %v337_v10 }
 0x1ab   :  { %v583_v13 = vpack.c.bf16 %v378_v12, %v377_v11  ;;  %v371_v18 = vmax.f32 %v338_v15, 0.0 }
 0x1ad   :  { %599 = vst [vmem:[#allocation8 + $0x28] sm:$0xff] %v583_v13  }
 0x1ae   :  { %v357_v14 = vpop.f32.mrf.mxu3 }
 0x1af   :  { %v358_v20 = vadd.f32 %v624_v49, %v357_v14 }
 0x1b0   :  { %v339_v16 = vpop.f32.mrf.mxu1 }
 0x1b1   :  { %v340_v17 = vadd.f32 %v624_v49, %v339_v16  ;;  %v379_v25 = vmax.f32 %v358_v20, 0.0 }
 0x1b3   :  { %v372_v19 = vmax.f32 %v340_v17, 0.0 }
 0x1b5   :  { %v568_v21 = vpack.c.bf16 %v372_v19, %v371_v18 }
 0x1b6   :  { %v359_v22 = vpop.f32.mrf.mxu3 }
 0x1b7   :  { %596 = vst [vmem:[#allocation8 + $0x10] sm:$0xff] %v568_v21   ;;  %v360_v23 = vadd.f32 %v624_v49, %v359_v22 }
 0x1b8   :  { %v342_v24 = vpop.f32.mrf.mxu1 }
 0x1b9   :  { %v380_v26 = vmax.f32 %v360_v23, 0.0  ;;  %v343_v29 = vadd.f32 %v624_v49, %v342_v24 }
 0x1bb   :  { %v588_v27 = vpack.c.bf16 %v380_v26, %v379_v25  ;;  %v373_v32 = vmax.f32 %v343_v29, 0.0 }
 0x1bd   :  { %600 = vst [vmem:[#allocation8 + $0x30] sm:$0xff] %v588_v27  }
 0x1be   :  { %v362_v28 = vpop.f32.mrf.mxu3 }
 0x1bf   :  { %v363_v34 = vadd.f32 %v624_v49, %v362_v28 }
 0x1c0   :  { %v344_v30 = vpop.f32.mrf.mxu1 }
 0x1c1   :  { %v345_v31 = vadd.f32 %v624_v49, %v344_v30  ;;  %v381_v38 = vmax.f32 %v363_v34, 0.0 }
 0x1c3   :  { %v374_v33 = vmax.f32 %v345_v31, 0.0 }
 0x1c5   :  { %v573_v35 = vpack.c.bf16 %v374_v33, %v373_v32 }
 0x1c6   :  { %v364_v36 = vpop.f32.mrf.mxu3 }
 0x1c7   :  { %597 = vst [vmem:[#allocation8 + $0x18] sm:$0xff] %v573_v35   ;;  %v365_v37 = vadd.f32 %v624_v49, %v364_v36 }
 0x1c9   :  { %v382_v39 = vmax.f32 %v365_v37, 0.0 }
 0x1cb   :  { %v593_v40 = vpack.c.bf16 %v382_v39, %v381_v38 }
 0x1cd   :  { %601 = vst [vmem:[#allocation8 + $0x38] sm:$0xff] %v593_v40  }
 0x1ce   :  { %427 = dma.vmem_to_hbm [thread:$0]  %s420_s5, 1024, %s422_s8, [#allocation4], %s728_s23, %s728_s23, %s729_s24  }
 0x1cf   :  { %725 = dma.done.wait [#allocation4], 1024  }
 0x1d0   :  { %726 = vsyncadd [#allocation4], 4294966272 }
 0x1d1   :  { %432 = vsyncpa [#allocation3], 1 }
 0x1d2   :  { %433 = vsyncpa [#allocation6], 1 }
 0x1d3   :  { %434 = vsyncpa [#allocation4], 1 }

</bundles_post_ra>
